<compile_context>
chip_gen: v5e
topology: v5e:2x2
jax: 0.10.0
libtpu: 0.0.40
codegen_flags: <defaults>
</compile_context>

<pallas_src>
import functools

import jax
import jax.numpy as jnp
import numpy as np
from jax.experimental import pallas as pl
from jax.experimental.pallas import tpu as pltpu

# ----------------------------- config ---------------------------------------
NUM_VARS = 3
NUM_YS = 1
C_IN = NUM_VARS + NUM_YS          # numberofVars + numberofYs
U = 32                            # embeddingSize
B = 2                             # batch
P = 16                            # points
EPS = 1e-5
LANES = 128                       # TPU lane width; hidden channel dims padded to this
X_LANES = 8                       # input channel padding (sublane-aligned, 2x not 32x)
assert C_IN <= X_LANES
assert 4 * U <= LANES             # widest layer (conv3 out / fc1 in) fits one lane tile

# Packed parameter slab layout (single array -> single DMA):
#   rows [  0,   8) : conv1 weight  [C_IN, U]  zero-padded to [8, 128]
#   rows [  8, 136) : conv2 weight  [U, 2U]    zero-padded to [128, 128]
#   rows [136, 264) : conv3 weight  [2U, 4U]   zero-padded to [128, 128]
#   rows [264, 392) : fc1   weight  [4U, 2U]   zero-padded to [128, 128]
#   rows [392, 520) : fc2   weight  [2U, U]    zero-padded to [128, 128]
#   rows [520, 536) : (gamma, beta) pairs for bn0..bn5 (12 rows) + 4 pad rows
W1_OFF = 0
W2_OFF = W1_OFF + X_LANES
W3_OFF = W2_OFF + LANES
W4_OFF = W3_OFF + LANES
W5_OFF = W4_OFF + LANES
BN_OFF = W5_OFF + LANES
PACK_ROWS = BN_OFF + 16


# ----------------------------- kernel ---------------------------------------
def tnet_kernel(x_ref, p_ref, out_ref, *, batch, points):
    """x_ref  : [batch*points, 8]  f32 (channels zero-padded to 8)
       p_ref  : [536, 128]         f32 (packed weights + BN params, see layout above)
       out_ref: [batch, 128]       f32 (first U lanes hold the result)"""
    bn_all = p_ref[BN_OFF:BN_OFF + 16, :]          # [16,128], 8-aligned single load

    def stats(h):
        mean = jnp.mean(h, axis=0, keepdims=True)
        var = jnp.mean(jnp.square(h - mean), axis=0, keepdims=True)   # biased, matches PyTorch train-mode
        return mean, var

    def gamma_beta(idx, lanes):
        return (bn_all[2 * idx:2 * idx + 1, :lanes],
                bn_all[2 * idx + 1:2 * idx + 2, :lanes])

    def bn_folded(h, idx, lanes=LANES):
        # Per-channel scale/shift folding: 2 VALU ops per element instead of 4.
        # Used where stats are over batch*points rows (rsqrt stays O(1)).
        g, b_ = gamma_beta(idx, lanes)
        mean, var = stats(h)
        scale = g * jax.lax.rsqrt(var + EPS)        # [1, lanes]
        shift = b_ - mean * scale                   # [1, lanes]
        return h * scale + shift

    def bn_exact(h, idx):
        # Reference-order formula for the fc BNs: stats over only `batch` rows,
        # where rounding is amplified by up to 1/sqrt(eps); keep bit-comparable.
        g, b_ = gamma_beta(idx, LANES)
        mean, var = stats(h)
        return (h - mean) * jax.lax.rsqrt(var + EPS) * g + b_

    def conv_layer(h, w_off, w_rows, bn_idx):
        # kernel-size-1 conv == dense MXU matmul; bias omitted (BN-cancelled).
        w = p_ref[w_off:w_off + w_rows, :]          # static, sublane-aligned slice
        y = jnp.dot(h, w, preferred_element_type=jnp.float32)
        return jnp.maximum(bn_folded(y, bn_idx), 0.0)

    def fc_layer(h, w_off, bn_idx):
        w = p_ref[w_off:w_off + LANES, :]
        y = jnp.dot(h, w, preferred_element_type=jnp.float32)
        return jnp.maximum(bn_exact(y, bn_idx), 0.0)

    x = bn_folded(x_ref[...], 0, lanes=X_LANES)     # input_batch_norm   [B*P, 8]
    h = conv_layer(x, W1_OFF, X_LANES, 1)           # conv1 + bn1 + relu [B*P, 128]
    h = conv_layer(h, W2_OFF, LANES, 2)             # conv2 + bn2 + relu [B*P, 128]
    h = conv_layer(h, W3_OFF, LANES, 3)             # conv3 + bn3 + relu [B*P, 128]

    # max over points per batch element (rows are batch-major, then points):
    # free sublane-split reshape + XLU reduce while P % 8 == 0 and h is resident.
    pooled = jnp.max(h.reshape(batch, points, LANES), axis=1)     # [B, 128]

    z = fc_layer(pooled, W4_OFF, 4)                 # fc1 + bn4 + relu   [B, 128]
    z = fc_layer(z, W5_OFF, 5)                      # fc2 + bn5 + relu   [B, 128]
    out_ref[...] = z                                # lane-dense store


# ----------------------------- param packing --------------------------------
def pack_params(params):
    """Pack all 22 per-layer parameters into ONE lane-dense [536,128] slab.
       Conv/fc biases are dropped (cancelled by the following BatchNorm)."""
    (g0, be0,
     w1, b1, g1, be1,
     w2, b2, g2, be2,
     w3, b3, g3, be3,
     w4, b4, g4, be4,
     w5, b5, g5, be5) = params

    def pad_block(a, rows):
        return jnp.pad(a, ((0, rows - a.shape[0]), (0, LANES - a.shape[1])))

    blocks = [
        pad_block(w1, X_LANES),    # conv1, 8 rows (matches 8-lane padded x)
        pad_block(w2, LANES),      # conv2
        pad_block(w3, LANES),      # conv3
        pad_block(w4, LANES),      # fc1
        pad_block(w5, LANES),      # fc2
    ]
    bn_rows = [g0, be0, g1, be1, g2, be2, g3, be3, g4, be4, g5, be5]
    blocks += [pad_block(v, 1) for v in bn_rows]
    blocks += [jnp.zeros((4, LANES), jnp.float32)]   # pad BN block to 16 rows
    pack = jnp.concatenate(blocks, axis=0)
    assert pack.shape == (PACK_ROWS, LANES)
    return pack


# ----------------------------- wrapper ---------------------------------------
def tnet_forward(x_ncw, param_pack):
    """x_ncw: [B, C_in, P] float32 (PyTorch layout).  Returns [B, U]."""
    b, c, p = x_ncw.shape
    # NCW -> [rows, channels], rows batch-major then points (pool reshape relies on this).
    x_flat = jnp.transpose(x_ncw, (0, 2, 1)).reshape(b * p, c)      # [B*P, C_in]
    x8 = jnp.pad(x_flat, ((0, 0), (0, X_LANES - c)))                # [B*P, 8] (not 128)

    kernel = functools.partial(tnet_kernel, batch=b, points=p)
    vmem = pl.BlockSpec(memory_space=pltpu.MemorySpace.VMEM)

    out_pad = pl.pallas_call(
        kernel,
        out_shape=jax.ShapeDtypeStruct((b, LANES), jnp.float32),
        in_specs=[vmem, vmem],            # 2 input DMAs total (x, packed params)
        out_specs=vmem,
        # Explicit limit (far above this kernel's <1 MiB footprint); safe on
        # v5e / v6e / v7x scoped-VMEM defaults.
        compiler_params=pltpu.CompilerParams(vmem_limit_bytes=16 * 1024 * 1024),
    )(x8, param_pack)

    return out_pad[:, :U]


# ----------------------------- param init ------------------------------------
def init_params(key):
    def uinit(k, shape, fan_in):
        bound = 1.0 / np.sqrt(fan_in)
        return jax.random.uniform(k, shape, jnp.float32, -bound, bound)

    ks = jax.random.split(key, 10)
    # weight matrices stored as [in, out]; biases / BN params as [1, C]
    w1 = uinit(ks[0], (C_IN, U), C_IN);       b1 = uinit(ks[1], (1, U), C_IN)
    w2 = uinit(ks[2], (U, 2 * U), U);         b2 = uinit(ks[3], (1, 2 * U), U)
    w3 = uinit(ks[4], (2 * U, 4 * U), 2 * U); b3 = uinit(ks[5], (1, 4 * U), 2 * U)
    w4 = uinit(ks[6], (4 * U, 2 * U), 4 * U); b4 = uinit(ks[7], (1, 2 * U), 4 * U)
    w5 = uinit(ks[8], (2 * U, U), 2 * U);     b5 = uinit(ks[9], (1, U), 2 * U)

    def bn_params(c):  # PyTorch default BN init: gamma=1, beta=0
        return jnp.ones((1, c), jnp.float32), jnp.zeros((1, c), jnp.float32)

    g0, be0 = bn_params(C_IN)
    g1, be1 = bn_params(U)
    g2, be2 = bn_params(2 * U)
    g3, be3 = bn_params(4 * U)
    g4, be4 = bn_params(2 * U)
    g5, be5 = bn_params(U)

    return (g0, be0,
            w1, b1, g1, be1,
            w2, b2, g2, be2,
            w3, b3, g3, be3,
            w4, b4, g4, be4,
            w5, b5, g5, be5)


# ----------------------------- pure-JAX reference -----------------------------
def reference_forward(x_ncw, params):
    # Faithful f32 forward of the PyTorch module (biases included — they are
    # mathematically cancelled by the training-mode BN, which is why the
    # kernel omits them).
    (g0, be0,
     w1, b1, g1, be1,
     w2, b2, g2, be2,
     w3, b3, g3, be3,
     w4, b4, g4, be4,
     w5, b5, g5, be5) = params

    def bn(h, g, b_):
        mean = jnp.mean(h, axis=0, keepdims=True)
        var = jnp.mean((h - mean) ** 2, axis=0, keepdims=True)
        return (h - mean) * jax.lax.rsqrt(var + EPS) * g + b_

    b, c, p = x_ncw.shape
    x = jnp.transpose(x_ncw, (0, 2, 1)).reshape(b * p, c)
    x = bn(x, g0, be0)
    h = jax.nn.relu(bn(x @ w1 + b1, g1, be1))
    h = jax.nn.relu(bn(h @ w2 + b2, g2, be2))
    h = jax.nn.relu(bn(h @ w3 + b3, g3, be3))
    pooled = jnp.max(h.reshape(b, p, 4 * U), axis=1)
    z = jax.nn.relu(bn(pooled @ w4 + b4, g4, be4))
    z = jax.nn.relu(bn(z @ w5 + b5, g5, be5))
    return z


# ----------------------------- main -------------------------------------------
if __name__ == "__main__":
    key = jax.random.PRNGKey(0)
    k_x, k_p = jax.random.split(key)

    x = jax.random.normal(k_x, (B, C_IN, P), jnp.float32)   # [batch, #features, #points]
    params = init_params(k_p)
    param_pack = pack_params(params)

    out = tnet_forward(x, param_pack)
    out = jax.block_until_ready(out)

    ref = reference_forward(x, params)
    assert out.shape == (B, U)
    np.testing.assert_allclose(np.asarray(out), np.asarray(ref), rtol=1e-3, atol=1e-3)

    print("KERNEL_OK")
</pallas_src>

<mosaic_0001>
module attributes {stable_mosaic.version = 11 : i64} {
  func.func @tnet_kernel(%arg0: memref<32x8xf32, #tpu.memory_space<vmem>>, %arg1: memref<536x128xf32, #tpu.memory_space<vmem>>, %arg2: memref<2x128xf32, #tpu.memory_space<vmem>>) attributes {dimension_semantics = [], scalar_prefetch = 0 : i64, scratch_operands = 0 : i64, tpu.core_type = #tpu.core_type<tc>} {
    %c520 = arith.constant 520 : index
    %c0 = arith.constant 0 : index
    %0 = vector.load %arg1[%c520, %c0] : memref<536x128xf32, #tpu.memory_space<vmem>>, vector<16x128xf32>
    %c0_0 = arith.constant 0 : index
    %c0_1 = arith.constant 0 : index
    %1 = vector.load %arg0[%c0_0, %c0_1] : memref<32x8xf32, #tpu.memory_space<vmem>>, vector<32x8xf32>
    %2 = vector.extract_strided_slice %0 {offsets = [0, 0], sizes = [1, 8], strides = [1, 1]} : vector<16x128xf32> to vector<1x8xf32>
    %3 = vector.extract_strided_slice %0 {offsets = [1, 0], sizes = [1, 8], strides = [1, 1]} : vector<16x128xf32> to vector<1x8xf32>
    %cst = arith.constant dense<0.000000e+00> : vector<8xf32>
    %4 = vector.multi_reduction <add>, %1, %cst [0] : vector<32x8xf32> to vector<8xf32>
    %5 = vector.shape_cast %4 : vector<8xf32> to vector<1x8xf32>
    %cst_2 = arith.constant 3.200000e+01 : f32
    %6 = vector.broadcast %cst_2 : f32 to vector<1x8xf32>
    %7 = arith.divf %5, %6 : vector<1x8xf32>
    %8 = vector.broadcast %7 : vector<1x8xf32> to vector<32x8xf32>
    %9 = arith.subf %1, %8 : vector<32x8xf32>
    %10 = arith.mulf %9, %9 : vector<32x8xf32>
    %cst_3 = arith.constant dense<0.000000e+00> : vector<8xf32>
    %11 = vector.multi_reduction <add>, %10, %cst_3 [0] : vector<32x8xf32> to vector<8xf32>
    %12 = vector.shape_cast %11 : vector<8xf32> to vector<1x8xf32>
    %cst_4 = arith.constant 3.200000e+01 : f32
    %13 = vector.broadcast %cst_4 : f32 to vector<1x8xf32>
    %14 = arith.divf %12, %13 : vector<1x8xf32>
    %cst_5 = arith.constant 9.99999974E-6 : f32
    %15 = vector.broadcast %cst_5 : f32 to vector<1x8xf32>
    %16 = arith.addf %14, %15 : vector<1x8xf32>
    %17 = math.rsqrt %16 : vector<1x8xf32>
    %18 = arith.mulf %2, %17 : vector<1x8xf32>
    %19 = arith.mulf %7, %18 : vector<1x8xf32>
    %20 = arith.subf %3, %19 : vector<1x8xf32>
    %21 = vector.broadcast %18 : vector<1x8xf32> to vector<32x8xf32>
    %22 = arith.mulf %1, %21 : vector<32x8xf32>
    %23 = vector.broadcast %20 : vector<1x8xf32> to vector<32x8xf32>
    %24 = arith.addf %22, %23 : vector<32x8xf32>
    %c0_6 = arith.constant 0 : index
    %c0_7 = arith.constant 0 : index
    %25 = vector.load %arg1[%c0_6, %c0_7] : memref<536x128xf32, #tpu.memory_space<vmem>>, vector<8x128xf32>
    %cst_8 = arith.constant dense<0.000000e+00> : vector<32x128xf32>
    %26 = tpu.matmul %24, %25, %cst_8 {dimension_numbers = #tpu.dot_dimension_numbers<[1], [0], [0], [1], [0, 0, 1, 1], [], []>} : vector<32x8xf32>, vector<8x128xf32>, vector<32x128xf32> -> vector<32x128xf32>
    %27 = vector.extract_strided_slice %0 {offsets = [2, 0], sizes = [1, 128], strides = [1, 1]} : vector<16x128xf32> to vector<1x128xf32>
    %28 = vector.extract_strided_slice %0 {offsets = [3, 0], sizes = [1, 128], strides = [1, 1]} : vector<16x128xf32> to vector<1x128xf32>
    %cst_9 = arith.constant dense<0.000000e+00> : vector<128xf32>
    %29 = vector.multi_reduction <add>, %26, %cst_9 [0] : vector<32x128xf32> to vector<128xf32>
    %30 = vector.shape_cast %29 : vector<128xf32> to vector<1x128xf32>
    %cst_10 = arith.constant 3.200000e+01 : f32
    %31 = vector.broadcast %cst_10 : f32 to vector<1x128xf32>
    %32 = arith.divf %30, %31 : vector<1x128xf32>
    %33 = vector.broadcast %32 : vector<1x128xf32> to vector<32x128xf32>
    %34 = arith.subf %26, %33 : vector<32x128xf32>
    %35 = arith.mulf %34, %34 : vector<32x128xf32>
    %cst_11 = arith.constant dense<0.000000e+00> : vector<128xf32>
    %36 = vector.multi_reduction <add>, %35, %cst_11 [0] : vector<32x128xf32> to vector<128xf32>
    %37 = vector.shape_cast %36 : vector<128xf32> to vector<1x128xf32>
    %cst_12 = arith.constant 3.200000e+01 : f32
    %38 = vector.broadcast %cst_12 : f32 to vector<1x128xf32>
    %39 = arith.divf %37, %38 : vector<1x128xf32>
    %cst_13 = arith.constant 9.99999974E-6 : f32
    %40 = vector.broadcast %cst_13 : f32 to vector<1x128xf32>
    %41 = arith.addf %39, %40 : vector<1x128xf32>
    %42 = math.rsqrt %41 : vector<1x128xf32>
    %43 = arith.mulf %27, %42 : vector<1x128xf32>
    %44 = arith.mulf %32, %43 : vector<1x128xf32>
    %45 = arith.subf %28, %44 : vector<1x128xf32>
    %46 = vector.broadcast %43 : vector<1x128xf32> to vector<32x128xf32>
    %47 = arith.mulf %26, %46 : vector<32x128xf32>
    %48 = vector.broadcast %45 : vector<1x128xf32> to vector<32x128xf32>
    %49 = arith.addf %47, %48 : vector<32x128xf32>
    %cst_14 = arith.constant 0.000000e+00 : f32
    %50 = vector.broadcast %cst_14 : f32 to vector<32x128xf32>
    %51 = arith.maximumf %49, %50 : vector<32x128xf32>
    %c8 = arith.constant 8 : index
    %c0_15 = arith.constant 0 : index
    %52 = vector.load %arg1[%c8, %c0_15] : memref<536x128xf32, #tpu.memory_space<vmem>>, vector<128x128xf32>
    %cst_16 = arith.constant dense<0.000000e+00> : vector<32x128xf32>
    %53 = tpu.matmul %51, %52, %cst_16 {dimension_numbers = #tpu.dot_dimension_numbers<[1], [0], [0], [1], [0, 0, 1, 1], [], []>} : vector<32x128xf32>, vector<128x128xf32>, vector<32x128xf32> -> vector<32x128xf32>
    %54 = vector.extract_strided_slice %0 {offsets = [4, 0], sizes = [1, 128], strides = [1, 1]} : vector<16x128xf32> to vector<1x128xf32>
    %55 = vector.extract_strided_slice %0 {offsets = [5, 0], sizes = [1, 128], strides = [1, 1]} : vector<16x128xf32> to vector<1x128xf32>
    %cst_17 = arith.constant dense<0.000000e+00> : vector<128xf32>
    %56 = vector.multi_reduction <add>, %53, %cst_17 [0] : vector<32x128xf32> to vector<128xf32>
    %57 = vector.shape_cast %56 : vector<128xf32> to vector<1x128xf32>
    %cst_18 = arith.constant 3.200000e+01 : f32
    %58 = vector.broadcast %cst_18 : f32 to vector<1x128xf32>
    %59 = arith.divf %57, %58 : vector<1x128xf32>
    %60 = vector.broadcast %59 : vector<1x128xf32> to vector<32x128xf32>
    %61 = arith.subf %53, %60 : vector<32x128xf32>
    %62 = arith.mulf %61, %61 : vector<32x128xf32>
    %cst_19 = arith.constant dense<0.000000e+00> : vector<128xf32>
    %63 = vector.multi_reduction <add>, %62, %cst_19 [0] : vector<32x128xf32> to vector<128xf32>
    %64 = vector.shape_cast %63 : vector<128xf32> to vector<1x128xf32>
    %cst_20 = arith.constant 3.200000e+01 : f32
    %65 = vector.broadcast %cst_20 : f32 to vector<1x128xf32>
    %66 = arith.divf %64, %65 : vector<1x128xf32>
    %cst_21 = arith.constant 9.99999974E-6 : f32
    %67 = vector.broadcast %cst_21 : f32 to vector<1x128xf32>
    %68 = arith.addf %66, %67 : vector<1x128xf32>
    %69 = math.rsqrt %68 : vector<1x128xf32>
    %70 = arith.mulf %54, %69 : vector<1x128xf32>
    %71 = arith.mulf %59, %70 : vector<1x128xf32>
    %72 = arith.subf %55, %71 : vector<1x128xf32>
    %73 = vector.broadcast %70 : vector<1x128xf32> to vector<32x128xf32>
    %74 = arith.mulf %53, %73 : vector<32x128xf32>
    %75 = vector.broadcast %72 : vector<1x128xf32> to vector<32x128xf32>
    %76 = arith.addf %74, %75 : vector<32x128xf32>
    %cst_22 = arith.constant 0.000000e+00 : f32
    %77 = vector.broadcast %cst_22 : f32 to vector<32x128xf32>
    %78 = arith.maximumf %76, %77 : vector<32x128xf32>
    %c136 = arith.constant 136 : index
    %c0_23 = arith.constant 0 : index
    %79 = vector.load %arg1[%c136, %c0_23] : memref<536x128xf32, #tpu.memory_space<vmem>>, vector<128x128xf32>
    %cst_24 = arith.constant dense<0.000000e+00> : vector<32x128xf32>
    %80 = tpu.matmul %78, %79, %cst_24 {dimension_numbers = #tpu.dot_dimension_numbers<[1], [0], [0], [1], [0, 0, 1, 1], [], []>} : vector<32x128xf32>, vector<128x128xf32>, vector<32x128xf32> -> vector<32x128xf32>
    %81 = vector.extract_strided_slice %0 {offsets = [6, 0], sizes = [1, 128], strides = [1, 1]} : vector<16x128xf32> to vector<1x128xf32>
    %82 = vector.extract_strided_slice %0 {offsets = [7, 0], sizes = [1, 128], strides = [1, 1]} : vector<16x128xf32> to vector<1x128xf32>
    %cst_25 = arith.constant dense<0.000000e+00> : vector<128xf32>
    %83 = vector.multi_reduction <add>, %80, %cst_25 [0] : vector<32x128xf32> to vector<128xf32>
    %84 = vector.shape_cast %83 : vector<128xf32> to vector<1x128xf32>
    %cst_26 = arith.constant 3.200000e+01 : f32
    %85 = vector.broadcast %cst_26 : f32 to vector<1x128xf32>
    %86 = arith.divf %84, %85 : vector<1x128xf32>
    %87 = vector.broadcast %86 : vector<1x128xf32> to vector<32x128xf32>
    %88 = arith.subf %80, %87 : vector<32x128xf32>
    %89 = arith.mulf %88, %88 : vector<32x128xf32>
    %cst_27 = arith.constant dense<0.000000e+00> : vector<128xf32>
    %90 = vector.multi_reduction <add>, %89, %cst_27 [0] : vector<32x128xf32> to vector<128xf32>
    %91 = vector.shape_cast %90 : vector<128xf32> to vector<1x128xf32>
    %cst_28 = arith.constant 3.200000e+01 : f32
    %92 = vector.broadcast %cst_28 : f32 to vector<1x128xf32>
    %93 = arith.divf %91, %92 : vector<1x128xf32>
    %cst_29 = arith.constant 9.99999974E-6 : f32
    %94 = vector.broadcast %cst_29 : f32 to vector<1x128xf32>
    %95 = arith.addf %93, %94 : vector<1x128xf32>
    %96 = math.rsqrt %95 : vector<1x128xf32>
    %97 = arith.mulf %81, %96 : vector<1x128xf32>
    %98 = arith.mulf %86, %97 : vector<1x128xf32>
    %99 = arith.subf %82, %98 : vector<1x128xf32>
    %100 = vector.broadcast %97 : vector<1x128xf32> to vector<32x128xf32>
    %101 = arith.mulf %80, %100 : vector<32x128xf32>
    %102 = vector.broadcast %99 : vector<1x128xf32> to vector<32x128xf32>
    %103 = arith.addf %101, %102 : vector<32x128xf32>
    %cst_30 = arith.constant 0.000000e+00 : f32
    %104 = vector.broadcast %cst_30 : f32 to vector<32x128xf32>
    %105 = arith.maximumf %103, %104 : vector<32x128xf32>
    %106 = vector.shape_cast %105 : vector<32x128xf32> to vector<2x16x128xf32>
    %cst_31 = arith.constant dense<0xFF800000> : vector<2x128xf32>
    %107 = vector.multi_reduction <maximumf>, %106, %cst_31 [1] : vector<2x16x128xf32> to vector<2x128xf32>
    %c264 = arith.constant 264 : index
    %c0_32 = arith.constant 0 : index
    %108 = vector.load %arg1[%c264, %c0_32] : memref<536x128xf32, #tpu.memory_space<vmem>>, vector<128x128xf32>
    %cst_33 = arith.constant dense<0.000000e+00> : vector<2x128xf32>
    %109 = tpu.matmul %107, %108, %cst_33 {dimension_numbers = #tpu.dot_dimension_numbers<[1], [0], [0], [1], [0, 0, 1, 1], [], []>} : vector<2x128xf32>, vector<128x128xf32>, vector<2x128xf32> -> vector<2x128xf32>
    %110 = vector.extract_strided_slice %0 {offsets = [8, 0], sizes = [1, 128], strides = [1, 1]} : vector<16x128xf32> to vector<1x128xf32>
    %111 = vector.extract_strided_slice %0 {offsets = [9, 0], sizes = [1, 128], strides = [1, 1]} : vector<16x128xf32> to vector<1x128xf32>
    %cst_34 = arith.constant dense<0.000000e+00> : vector<128xf32>
    %112 = vector.multi_reduction <add>, %109, %cst_34 [0] : vector<2x128xf32> to vector<128xf32>
    %113 = vector.shape_cast %112 : vector<128xf32> to vector<1x128xf32>
    %cst_35 = arith.constant 2.000000e+00 : f32
    %114 = vector.broadcast %cst_35 : f32 to vector<1x128xf32>
    %115 = arith.divf %113, %114 : vector<1x128xf32>
    %116 = vector.broadcast %115 : vector<1x128xf32> to vector<2x128xf32>
    %117 = arith.subf %109, %116 : vector<2x128xf32>
    %118 = arith.mulf %117, %117 : vector<2x128xf32>
    %cst_36 = arith.constant dense<0.000000e+00> : vector<128xf32>
    %119 = vector.multi_reduction <add>, %118, %cst_36 [0] : vector<2x128xf32> to vector<128xf32>
    %120 = vector.shape_cast %119 : vector<128xf32> to vector<1x128xf32>
    %cst_37 = arith.constant 2.000000e+00 : f32
    %121 = vector.broadcast %cst_37 : f32 to vector<1x128xf32>
    %122 = arith.divf %120, %121 : vector<1x128xf32>
    %123 = vector.broadcast %115 : vector<1x128xf32> to vector<2x128xf32>
    %124 = arith.subf %109, %123 : vector<2x128xf32>
    %cst_38 = arith.constant 9.99999974E-6 : f32
    %125 = vector.broadcast %cst_38 : f32 to vector<1x128xf32>
    %126 = arith.addf %122, %125 : vector<1x128xf32>
    %127 = math.rsqrt %126 : vector<1x128xf32>
    %128 = vector.broadcast %127 : vector<1x128xf32> to vector<2x128xf32>
    %129 = arith.mulf %124, %128 : vector<2x128xf32>
    %130 = vector.broadcast %110 : vector<1x128xf32> to vector<2x128xf32>
    %131 = arith.mulf %129, %130 : vector<2x128xf32>
    %132 = vector.broadcast %111 : vector<1x128xf32> to vector<2x128xf32>
    %133 = arith.addf %131, %132 : vector<2x128xf32>
    %cst_39 = arith.constant 0.000000e+00 : f32
    %134 = vector.broadcast %cst_39 : f32 to vector<2x128xf32>
    %135 = arith.maximumf %133, %134 : vector<2x128xf32>
    %c392 = arith.constant 392 : index
    %c0_40 = arith.constant 0 : index
    %136 = vector.load %arg1[%c392, %c0_40] : memref<536x128xf32, #tpu.memory_space<vmem>>, vector<128x128xf32>
    %cst_41 = arith.constant dense<0.000000e+00> : vector<2x128xf32>
    %137 = tpu.matmul %135, %136, %cst_41 {dimension_numbers = #tpu.dot_dimension_numbers<[1], [0], [0], [1], [0, 0, 1, 1], [], []>} : vector<2x128xf32>, vector<128x128xf32>, vector<2x128xf32> -> vector<2x128xf32>
    %138 = vector.extract_strided_slice %0 {offsets = [10, 0], sizes = [1, 128], strides = [1, 1]} : vector<16x128xf32> to vector<1x128xf32>
    %139 = vector.extract_strided_slice %0 {offsets = [11, 0], sizes = [1, 128], strides = [1, 1]} : vector<16x128xf32> to vector<1x128xf32>
    %cst_42 = arith.constant dense<0.000000e+00> : vector<128xf32>
    %140 = vector.multi_reduction <add>, %137, %cst_42 [0] : vector<2x128xf32> to vector<128xf32>
    %141 = vector.shape_cast %140 : vector<128xf32> to vector<1x128xf32>
    %cst_43 = arith.constant 2.000000e+00 : f32
    %142 = vector.broadcast %cst_43 : f32 to vector<1x128xf32>
    %143 = arith.divf %141, %142 : vector<1x128xf32>
    %144 = vector.broadcast %143 : vector<1x128xf32> to vector<2x128xf32>
    %145 = arith.subf %137, %144 : vector<2x128xf32>
    %146 = arith.mulf %145, %145 : vector<2x128xf32>
    %cst_44 = arith.constant dense<0.000000e+00> : vector<128xf32>
    %147 = vector.multi_reduction <add>, %146, %cst_44 [0] : vector<2x128xf32> to vector<128xf32>
    %148 = vector.shape_cast %147 : vector<128xf32> to vector<1x128xf32>
    %cst_45 = arith.constant 2.000000e+00 : f32
    %149 = vector.broadcast %cst_45 : f32 to vector<1x128xf32>
    %150 = arith.divf %148, %149 : vector<1x128xf32>
    %151 = vector.broadcast %143 : vector<1x128xf32> to vector<2x128xf32>
    %152 = arith.subf %137, %151 : vector<2x128xf32>
    %cst_46 = arith.constant 9.99999974E-6 : f32
    %153 = vector.broadcast %cst_46 : f32 to vector<1x128xf32>
    %154 = arith.addf %150, %153 : vector<1x128xf32>
    %155 = math.rsqrt %154 : vector<1x128xf32>
    %156 = vector.broadcast %155 : vector<1x128xf32> to vector<2x128xf32>
    %157 = arith.mulf %152, %156 : vector<2x128xf32>
    %158 = vector.broadcast %138 : vector<1x128xf32> to vector<2x128xf32>
    %159 = arith.mulf %157, %158 : vector<2x128xf32>
    %160 = vector.broadcast %139 : vector<1x128xf32> to vector<2x128xf32>
    %161 = arith.addf %159, %160 : vector<2x128xf32>
    %cst_47 = arith.constant 0.000000e+00 : f32
    %162 = vector.broadcast %cst_47 : f32 to vector<2x128xf32>
    %163 = arith.maximumf %161, %162 : vector<2x128xf32>
    %c0_48 = arith.constant 0 : index
    %c0_49 = arith.constant 0 : index
    %164 = vector.load %arg2[%c0_48, %c0_49] : memref<2x128xf32, #tpu.memory_space<vmem>>, vector<2x128xf32>
    tpu.vector_store %arg2[%c0_48, %c0_49], %163 {strides = array<i32>} : memref<2x128xf32, #tpu.memory_space<vmem>>, vector<2x128xf32>,
    return
  }
}

</mosaic_0001>

<bundles_post_ra>
// kernel: tpu_custom_call.1
= control target key start
LH: loop header
LB: loop body
LE: loop exit
PB: predicated region body
PF: predicated region fallthrough
CT: control target
= control target key end

     0   :  { %7 = vsyncpa [#allocation3], 0  ;;  %s847_s0 = inlined_call_operand.vmem [shape: f32[32,8], index: 0, kind: input, shape index: {}]   ;;  %s848_s1 = inlined_call_operand.hbm [shape: f32[536,128], index: 1, kind: input, shape index: {}]   ;;  %s849_s2 = inlined_call_operand.hbm [shape: f32[2,128], index: 2, kind: output, shape index: {}]  }
   0x1   :  { %8 = vsyncpa [#allocation4], 0  ;;  %s15_s11 = sshll.u32 %s848_s1, 4  ;;  %s679_s12 = smov [#allocation2]   ;;  %s16_s11 = int_to_ptr.hbm [resolvable:$true] %s15_s11 }
   0x2   :  { %s17_s13 = sshll.u32 %s679_s12, 4  ;;  %s680_s14 = smov 128   ;;  %s18_s13 = int_to_ptr.vmem [resolvable:$true] %s17_s13 }
   0x3   :  { %s681_s15 = smov 8  }
   0x4   :  { %23 = dma.hbm_to_vmem [thread:$0]  %s16_s11, 8576, %s18_s13, [#allocation3], %s680_s14, %s680_s14, %s681_s15  }
   0x5   :  { %675 = dma.done.wait [#allocation3], 8576  }
   0x6   :  { %676 = vsyncadd [#allocation3], 4294958720  ;;  %v682_v0 = vmov 32.0   ;;  %vm34_vm0 = vcmask 64512   ;;  %v105_v2 = vld [vmem:[#allocation2] sm:$0xff]  ;;  %v711_v4 = vld [vmem:[%s847_s0 + $0x8] sm:$0xff] }
   0x7   :  { %611 = vrcp.f32 %v682_v0  ;;  %v706_v3 = vld [vmem:[%s847_s0] sm:$0xff]  ;;  %133 = vmatpush.msra.mxu0 %v105_v2  ;;  %v716_v5 = vld [vmem:[%s847_s0 + $0x10] sm:$0xff]  ;;  %v721_v6 = vld [vmem:[%s847_s0 + $0x18] sm:$0xff]  ;;  %v36_v8 = vsel %vm34_vm0, %v711_v4, 0.0  ;;  %vm446_vm14 = vcmask 1041409   ;;  %vm469_vm15 = vcmask 1041408  }
   0x8   :  { %v35_v7 = vsel %vm34_vm0, %v706_v3, 0.0  ;;  %v38_v9 = vsel %vm34_vm0, %v716_v5, 0.0  ;;  %v40_v12 = vsel %vm34_vm0, %v721_v6, 0.0  ;;  %v743_v54 = vld [vmem:[#allocation2 + $0x208] sm:$0xff]  ;;  %s684_s0 = smov [#allocation5]   ;;  %s591_s26 = sshll.u32 %s849_s2, 4  ;;  %s592_s26 = int_to_ptr.hbm [resolvable:$true] %s591_s26 }
   0x9   :  { %v37_v11 = vadd.f32 %v36_v8, %v35_v7  ;;  %s589_s23 = sshll.u32 %s684_s0, 4  ;;  %s590_s23 = int_to_ptr.vmem [resolvable:$true] %s589_s23 }
   0xb   :  { %v39_v13 = vadd.f32 %v38_v9, %v37_v11 }
   0xd   :  { %v612_v1 = vpop.eup %611  ;;  %v41_v15 = vadd.f32 %v40_v12, %v39_v13 }
   0xe   :  { %v49_v10 = vmul.f32 32.0, %v612_v1  ;;  %vm53_vm1 = vweird.f32 %v612_v1 }
   0xf   :  { %v42_v16 = vrot.slane %v41_v15, 4 }
  0x10   :  { %v50_v14 = vsub.f32 1.0, %v49_v10 }
  0x11   :  { %v43_v18 = vadd.f32 %v42_v16, %v41_v15 }
  0x12   :  { %v51_v17 = vmul.f32 %v612_v1, %v50_v14 }
  0x13   :  { %v44_v19 = vrot.slane %v43_v18, 2 }
  0x14   :  { %v52_v20 = vadd.f32 %v612_v1, %v51_v17 }
  0x15   :  { %v45_v21 = vadd.f32 %v44_v19, %v43_v18  ;;  %v221_v19 = vld [vmem:[#allocation2 + $0x80] sm:$0xff] }
  0x16   :  { %v731_v23 = vsel %vm53_vm1, %v612_v1, %v52_v20  ;;  %222 = vmatpush.msra.mxu1 %v221_v19 }
  0x17   :  { %v46_v22 = vrot.slane %v45_v21, 1 }
  0x19   :  { %v47_v24 = vadd.f32 %v46_v22, %v45_v21  ;;  %v220_v21 = vld [vmem:[#allocation2 + $0x78] sm:$0xff] }
  0x1a   :  { %223 = vmatpush.msra.mxu1 %v220_v21 }
  0x1b   :  { %v55_v25 = vmul.f32 %v731_v23, %v47_v24  ;;  %v219_v24 = vld [vmem:[#allocation2 + $0x70] sm:$0xff] }
  0x1c   :  { %224 = vmatpush.msra.mxu1 %v219_v24 }
  0x1d   :  { %v56_v26 = vsub.f32 %v706_v3, %v55_v25  ;;  %v57_v27 = vsub.f32 %v711_v4, %v55_v25  ;;  %v58_v28 = vsub.f32 %v716_v5, %v55_v25  ;;  %v59_v29 = vsub.f32 %v721_v6, %v55_v25 }
  0x1f   :  { %v60_v30 = vmul.f32 %v56_v26, %v56_v26  ;;  %v61_v31 = vmul.f32 %v57_v27, %v57_v27  ;;  %v62_v32 = vmul.f32 %v58_v28, %v58_v28  ;;  %v63_v33 = vmul.f32 %v59_v29, %v59_v29  ;;  %v218_v28 = vld [vmem:[#allocation2 + $0x68] sm:$0xff] }
  0x20   :  { %225 = vmatpush.msra.mxu1 %v218_v28 }
  0x21   :  { %v64_v34 = vsel %vm34_vm0, %v60_v30, 0.0  ;;  %v65_v35 = vsel %vm34_vm0, %v61_v31, 0.0  ;;  %v67_v36 = vsel %vm34_vm0, %v62_v32, 0.0  ;;  %v69_v38 = vsel %vm34_vm0, %v63_v33, 0.0  ;;  %v217_v32 = vld [vmem:[#allocation2 + $0x60] sm:$0xff] }
  0x22   :  { %v66_v37 = vadd.f32 %v65_v35, %v64_v34  ;;  %226 = vmatpush.msra.mxu1 %v217_v32  ;;  %v216_v35 = vld [vmem:[#allocation2 + $0x58] sm:$0xff]  ;;  %v325_v32 = vld [vmem:[#allocation2 + $0x100] sm:$0xff] }
  0x23   :  { %326 = vmatpush.msra.mxu2 %v325_v32 }
  0x24   :  { %v68_v39 = vadd.f32 %v67_v36, %v66_v37  ;;  %227 = vmatpush.msra.mxu1 %v216_v35 }
  0x26   :  { %v70_v40 = vadd.f32 %v69_v38, %v68_v39  ;;  %v215_v38 = vld [vmem:[#allocation2 + $0x50] sm:$0xff] }
  0x27   :  { %228 = vmatpush.msra.mxu1 %v215_v38 }
  0x28   :  { %v71_v41 = vrot.slane %v70_v40, 4 }
  0x2a   :  { %v72_v42 = vadd.f32 %v71_v41, %v70_v40  ;;  %v214_v40 = vld [vmem:[#allocation2 + $0x48] sm:$0xff] }
  0x2b   :  { %229 = vmatpush.msra.mxu1 %v214_v40  ;;  %v322_v40 = vld [vmem:[#allocation2 + $0xe8] sm:$0xff] }
  0x2c   :  { %v73_v43 = vrot.slane %v72_v42, 2 }
  0x2e   :  { %v74_v44 = vadd.f32 %v73_v43, %v72_v42  ;;  %v213_v42 = vld [vmem:[#allocation2 + $0x40] sm:$0xff] }
  0x2f   :  { %230 = vmatpush.msra.mxu1 %v213_v42 }
  0x30   :  { %v75_v45 = vrot.slane %v74_v44, 1 }
  0x32   :  { %v76_v46 = vadd.f32 %v75_v45, %v74_v44  ;;  %v212_v44 = vld [vmem:[#allocation2 + $0x38] sm:$0xff] }
  0x33   :  { %231 = vmatpush.msra.mxu1 %v212_v44  ;;  %v321_v44 = vld [vmem:[#allocation2 + $0xe0] sm:$0xff] }
  0x34   :  { %v77_v47 = vmul.f32 %v76_v46, %v731_v23  ;;  %v211_v46 = vld [vmem:[#allocation2 + $0x30] sm:$0xff] }
  0x35   :  { %232 = vmatpush.msra.mxu1 %v211_v46 }
  0x36   :  { %v78_v48 = vadd.f32 1e-05, %v77_v47 }
  0x38   :  { %613 = vrsqrt.f32 %v78_v48  ;;  %vm85_vm2 = vweird.f32 %v78_v48 }
  0x3e   :  { %v614_v49 = vpop.eup %613 }
  0x3f   :  { %v80_v50 = vmul.f32 %v614_v49, %v78_v48  ;;  %vm86_vm3 = vweird.f32 %v614_v49  ;;  %v210_v48 = vld [vmem:[#allocation2 + $0x28] sm:$0xff] }
  0x40   :  { %vm87_vm4 = vmor %vm85_vm2, %vm86_vm3  ;;  %233 = vmatpush.msra.mxu1 %v210_v48 }
  0x41   :  { %v81_v51 = vmul.f32 %v614_v49, %v80_v50 }
  0x43   :  { %v82_v52 = vmul.f32 0.5, %v81_v51  ;;  %v208_v51 = vld [vmem:[#allocation2 + $0x18] sm:$0xff] }
  0x45   :  { %v83_v53 = vsub.f32 1.5, %v82_v52 }
  0x47   :  { %v84_v55 = vmul.f32 %v614_v49, %v83_v53  ;;  %v207_v53 = vld [vmem:[#allocation2 + $0x10] sm:$0xff] }
  0x49   :  { %v88_v56 = vsel %vm87_vm4, %v614_v49, %v84_v55  ;;  %v209_v49 = vld [vmem:[#allocation2 + $0x20] sm:$0xff] }
  0x4a   :  { %v89_v57 = vmul.f32 %v88_v56, %v743_v54  ;;  %234 = vmatpush.msra.mxu1 %v209_v49  ;;  %v206_v56 = vld [vmem:[#allocation2 + $0x8] sm:$0xff] }
  0x4c   :  { %v90_v58 = vmul.f32 %v89_v57, %v55_v25  ;;  %v95_v59 = vperm.slane %v89_v57, 0  ;;  %235 = vmatpush.msra.mxu1 %v208_v51 }
  0x4e   :  { %v92_v60 = vrot.slane %v90_v58, 7  ;;  %v96_v62 = vmul.f32 %v95_v59, %v706_v3  ;;  %v97_v1 = vmul.f32 %v95_v59, %v711_v4  ;;  %v98_v7 = vmul.f32 %v95_v59, %v716_v5  ;;  %236 = vmatpush.msra.mxu1 %v207_v53 }
  0x4f   :  { %v99_v9 = vmul.f32 %v95_v59, %v721_v6 }
  0x50   :  { %v94_v61 = vsub.f32 %v743_v54, %v92_v60  ;;  %237 = vmatpush.msra.mxu1 %v206_v56 }
  0x52   :  { %v100_v63 = vperm.slane %v94_v61, 1 }
  0x54   :  { %v101_v0 = vadd.f32 %v100_v63, %v96_v62  ;;  %v102_v2 = vadd.f32 %v100_v63, %v97_v1  ;;  %v103_v8 = vadd.f32 %v100_v63, %v98_v7  ;;  %v104_v10 = vadd.f32 %v100_v63, %v99_v9 }
  0x56   :  { %601 = vmatmul.msk.f32.vlgmr.msra.gmra.mxu0 %vm34_vm0, %v101_v0 }
  0x5e   :  { %602 = vmatmul.msk.f32.gmra.mxu0 %vm34_vm0, %v102_v2 }
  0x66   :  { %603 = vmatmul.msk.f32.gmra.mxu0 %vm34_vm0, %v103_v8 }
  0x6e   :  { %604 = vmatmul.msk.f32.gmra.mxu0 %vm34_vm0, %v104_v10 }
  0xd3   :  { %v755_v3 = vpop.f32.mrf.mxu0 }
  0xdb   :  { %v757_v11 = vpop.f32.mrf.mxu0 }
  0xdc   :  { %v147_v4 = vadd.f32 %v757_v11, %v755_v3 }
  0xe3   :  { %v759_v12 = vpop.f32.mrf.mxu0 }
  0xe4   :  { %v148_v13 = vadd.f32 %v147_v4, %v759_v12 }
  0xeb   :  { %v764_v5 = vpop.f32.mrf.mxu0 }
  0xec   :  { %v149_v14 = vadd.f32 %v148_v13, %v764_v5 }
  0xee   :  { %v150_v15 = vrot.slane %v149_v14, 4 }
  0xf0   :  { %v151_v6 = vadd.f32 %v150_v15, %v149_v14 }
  0xf2   :  { %v152_v16 = vrot.slane %v151_v6, 2 }
  0xf4   :  { %v153_v17 = vadd.f32 %v152_v16, %v151_v6 }
  0xf6   :  { %v154_v18 = vrot.slane %v153_v17, 1 }
  0xf8   :  { %v155_v20 = vadd.f32 %v154_v18, %v153_v17 }
  0xfa   :  { %v156_v22 = vmul.f32 %v155_v20, %v731_v23 }
  0xfc   :  { %v157_v25 = vsub.f32 %v755_v3, %v156_v22  ;;  %v158_v26 = vsub.f32 %v757_v11, %v156_v22  ;;  %v159_v27 = vsub.f32 %v759_v12, %v156_v22  ;;  %v160_v29 = vsub.f32 %v764_v5, %v156_v22 }
  0xfe   :  { %v161_v30 = vmul.f32 %v157_v25, %v157_v25  ;;  %v162_v31 = vmul.f32 %v158_v26, %v158_v26  ;;  %v163_v33 = vmul.f32 %v159_v27, %v159_v27  ;;  %v164_v36 = vmul.f32 %v160_v29, %v160_v29 }
 0x100   :  { %v165_v34 = vadd.f32 %v162_v31, %v161_v30 }
 0x102   :  { %v166_v37 = vadd.f32 %v165_v34, %v163_v33  ;;  %v324_v34 = vld [vmem:[#allocation2 + $0xf8] sm:$0xff] }
 0x103   :  { %327 = vmatpush.msra.mxu2 %v324_v34 }
 0x104   :  { %v167_v39 = vadd.f32 %v166_v37, %v164_v36  ;;  %v323_v36 = vld [vmem:[#allocation2 + $0xf0] sm:$0xff] }
 0x105   :  { %328 = vmatpush.msra.mxu2 %v323_v36 }
 0x106   :  { %v168_v41 = vrot.slane %v167_v39, 4 }
 0x107   :  { %329 = vmatpush.msra.mxu2 %v322_v40 }
 0x108   :  { %v169_v43 = vadd.f32 %v168_v41, %v167_v39 }
 0x109   :  { %330 = vmatpush.msra.mxu2 %v321_v44 }
 0x10a   :  { %v170_v45 = vrot.slane %v169_v43, 2 }
 0x10c   :  { %v171_v47 = vadd.f32 %v170_v45, %v169_v43 }
 0x10e   :  { %v172_v50 = vrot.slane %v171_v47, 1 }
 0x110   :  { %v173_v52 = vadd.f32 %v172_v50, %v171_v47  ;;  %v320_v47 = vld [vmem:[#allocation2 + $0xd8] sm:$0xff]  ;;  %v319_v50 = vld [vmem:[#allocation2 + $0xd0] sm:$0xff] }
 0x111   :  { %331 = vmatpush.msra.mxu2 %v320_v47 }
 0x112   :  { %v174_v55 = vmul.f32 %v173_v52, %v731_v23  ;;  %v318_v52 = vld [vmem:[#allocation2 + $0xc8] sm:$0xff] }
 0x113   :  { %332 = vmatpush.msra.mxu2 %v319_v50 }
 0x114   :  { %v175_v57 = vadd.f32 1e-05, %v174_v55  ;;  %v317_v55 = vld [vmem:[#allocation2 + $0xc0] sm:$0xff] }
 0x115   :  { %333 = vmatpush.msra.mxu2 %v318_v52 }
 0x116   :  { %615 = vrsqrt.f32 %v175_v57  ;;  %vm182_vm6 = vweird.f32 %v175_v57 }
 0x117   :  { %334 = vmatpush.msra.mxu2 %v317_v55 }
 0x11c   :  { %v616_v58 = vpop.eup %615 }
 0x11d   :  { %v177_v59 = vmul.f32 %v616_v58, %v175_v57  ;;  %vm183_vm5 = vweird.f32 %v616_v58  ;;  %v316_v57 = vld [vmem:[#allocation2 + $0xb8] sm:$0xff] }
 0x11e   :  { %vm184_vm7 = vmor %vm182_vm6, %vm183_vm5  ;;  %335 = vmatpush.msra.mxu2 %v316_v57 }
 0x11f   :  { %v178_v60 = vmul.f32 %v616_v58, %v177_v59  ;;  %v315_v59 = vld [vmem:[#allocation2 + $0xb0] sm:$0xff] }
 0x120   :  { %336 = vmatpush.msra.mxu2 %v315_v59  ;;  %v443_v59 = vld [vmem:[#allocation2 + $0x180] sm:$0xff] }
 0x121   :  { %v179_v61 = vmul.f32 0.5, %v178_v60  ;;  %449 = vmatpush.msra.mxu3 %v443_v59 }
 0x123   :  { %v180_v62 = vsub.f32 1.5, %v179_v61  ;;  %v314_v61 = vld [vmem:[#allocation2 + $0xa8] sm:$0xff] }
 0x124   :  { %337 = vmatpush.msra.mxu2 %v314_v61  ;;  %v442_v61 = vld [vmem:[#allocation2 + $0x178] sm:$0xff] }
 0x125   :  { %v181_v63 = vmul.f32 %v616_v58, %v180_v62  ;;  %v313_v62 = vld [vmem:[#allocation2 + $0xa0] sm:$0xff]  ;;  %450 = vmatpush.msra.mxu3 %v442_v61 }
 0x126   :  { %338 = vmatpush.msra.mxu2 %v313_v62 }
 0x127   :  { %v185_v0 = vsel %vm184_vm7, %v616_v58, %v181_v63 }
 0x128   :  { %v186_v1 = vmul.f32 %v185_v0, %v743_v54  ;;  %v312_v0 = vld [vmem:[#allocation2 + $0x98] sm:$0xff] }
 0x129   :  { %339 = vmatpush.msra.mxu2 %v312_v0 }
 0x12a   :  { %v187_v2 = vmul.f32 %v186_v1, %v156_v22  ;;  %v192_v7 = vperm.slane %v186_v1, 2 }
 0x12c   :  { %v189_v8 = vrot.slane %v187_v2, 7  ;;  %v193_v10 = vmul.f32 %v192_v7, %v755_v3  ;;  %v194_v15 = vmul.f32 %v192_v7, %v757_v11  ;;  %v195_v17 = vmul.f32 %v192_v7, %v759_v12  ;;  %v311_v2 = vld [vmem:[#allocation2 + $0x90] sm:$0xff] }
 0x12d   :  { %v196_v20 = vmul.f32 %v192_v7, %v764_v5  ;;  %340 = vmatpush.msra.mxu2 %v311_v2 }
 0x12e   :  { %v191_v9 = vsub.f32 %v743_v54, %v189_v8  ;;  %v310_v8 = vld [vmem:[#allocation2 + $0x88] sm:$0xff] }
 0x12f   :  { %341 = vmatpush.msra.mxu2 %v310_v8 }
 0x130   :  { %v197_v4 = vperm.slane %v191_v9, 3 }
 0x132   :  { %v198_v13 = vadd.f32 %v197_v4, %v193_v10  ;;  %v199_v6 = vadd.f32 %v197_v4, %v194_v15  ;;  %v200_v18 = vadd.f32 %v197_v4, %v195_v17  ;;  %v201_v21 = vadd.f32 %v197_v4, %v196_v20 }
 0x134   :  { %v202_v14 = vmax.f32 %v198_v13, 0.0  ;;  %v203_v16 = vmax.f32 %v199_v6, 0.0  ;;  %v204_v19 = vmax.f32 %v200_v18, 0.0  ;;  %v205_v22 = vmax.f32 %v201_v21, 0.0 }
 0x136   :  { %238 = vmatmul.f32.vlgmr.msra.gmra.mxu1 %v202_v14 }
 0x13e   :  { %241 = vmatmul.f32.gmra.mxu1 %v203_v16 }
 0x146   :  { %244 = vmatmul.f32.gmra.mxu1 %v204_v19 }
 0x14e   :  { %247 = vmatmul.f32.gmra.mxu1 %v205_v22 }
 0x1b3   :  { %v779_v3 = vpop.f32.mrf.mxu1 }
 0x1bb   :  { %v781_v24 = vpop.f32.mrf.mxu1 }
 0x1bc   :  { %v251_v11 = vadd.f32 %v781_v24, %v779_v3 }
 0x1c3   :  { %v783_v25 = vpop.f32.mrf.mxu1 }
 0x1c4   :  { %v252_v26 = vadd.f32 %v251_v11, %v783_v25 }
 0x1cb   :  { %v788_v12 = vpop.f32.mrf.mxu1 }
 0x1cc   :  { %v253_v27 = vadd.f32 %v252_v26, %v788_v12 }
 0x1ce   :  { %v254_v5 = vrot.slane %v253_v27, 4 }
 0x1d0   :  { %v255_v28 = vadd.f32 %v254_v5, %v253_v27 }
 0x1d2   :  { %v256_v29 = vrot.slane %v255_v28, 2 }
 0x1d4   :  { %v257_v30 = vadd.f32 %v256_v29, %v255_v28 }
 0x1d6   :  { %v258_v31 = vrot.slane %v257_v30, 1 }
 0x1d8   :  { %v259_v33 = vadd.f32 %v258_v31, %v257_v30 }
 0x1da   :  { %v260_v35 = vmul.f32 %v259_v33, %v731_v23 }
 0x1dc   :  { %v261_v37 = vsub.f32 %v779_v3, %v260_v35  ;;  %v262_v38 = vsub.f32 %v781_v24, %v260_v35  ;;  %v263_v39 = vsub.f32 %v783_v25, %v260_v35  ;;  %v264_v41 = vsub.f32 %v788_v12, %v260_v35 }
 0x1de   :  { %v265_v42 = vmul.f32 %v261_v37, %v261_v37  ;;  %v266_v43 = vmul.f32 %v262_v38, %v262_v38  ;;  %v267_v45 = vmul.f32 %v263_v39, %v263_v39  ;;  %v268_v48 = vmul.f32 %v264_v41, %v264_v41 }
 0x1e0   :  { %v269_v46 = vadd.f32 %v266_v43, %v265_v42 }
 0x1e2   :  { %v270_v49 = vadd.f32 %v269_v46, %v267_v45 }
 0x1e4   :  { %v271_v51 = vadd.f32 %v270_v49, %v268_v48 }
 0x1e6   :  { %v272_v53 = vrot.slane %v271_v51, 4 }
 0x1e8   :  { %v273_v56 = vadd.f32 %v272_v53, %v271_v51 }
 0x1ea   :  { %v274_v58 = vrot.slane %v273_v56, 2 }
 0x1ec   :  { %v275_v60 = vadd.f32 %v274_v58, %v273_v56 }
 0x1ee   :  { %v276_v63 = vrot.slane %v275_v60, 1 }
 0x1f0   :  { %v277_v1 = vadd.f32 %v276_v63, %v275_v60  ;;  %v441_v63 = vld [vmem:[#allocation2 + $0x170] sm:$0xff] }
 0x1f1   :  { %451 = vmatpush.msra.mxu3 %v441_v63  ;;  %v527_v63 = vld [vmem:[#allocation2 + $0x200] sm:$0xff] }
 0x1f2   :  { %v278_v7 = vmul.f32 %v277_v1, %v731_v23  ;;  %v440_v1 = vld [vmem:[#allocation2 + $0x168] sm:$0xff]  ;;  %528 = vmatpush.msrb.mxu0 %v527_v63 }
 0x1f3   :  { %452 = vmatpush.msra.mxu3 %v440_v1 }
 0x1f4   :  { %v279_v9 = vadd.f32 1e-05, %v278_v7  ;;  %v439_v7 = vld [vmem:[#allocation2 + $0x160] sm:$0xff] }
 0x1f5   :  { %453 = vmatpush.msra.mxu3 %v439_v7 }
 0x1f6   :  { %617 = vrsqrt.f32 %v279_v9  ;;  %vm286_vm9 = vweird.f32 %v279_v9 }
 0x1fc   :  { %v618_v10 = vpop.eup %617 }
 0x1fd   :  { %v281_v4 = vmul.f32 %v618_v10, %v279_v9  ;;  %vm287_vm8 = vweird.f32 %v618_v10  ;;  %v438_v9 = vld [vmem:[#allocation2 + $0x158] sm:$0xff] }
 0x1fe   :  { %vm288_vm10 = vmor %vm286_vm9, %vm287_vm8  ;;  %454 = vmatpush.msra.mxu3 %v438_v9  ;;  %v525_v9 = vld [vmem:[#allocation2 + $0x1f0] sm:$0xff] }
 0x1ff   :  { %v282_v13 = vmul.f32 %v618_v10, %v281_v4  ;;  %v437_v4 = vld [vmem:[#allocation2 + $0x150] sm:$0xff] }
 0x200   :  { %455 = vmatpush.msra.mxu3 %v437_v4  ;;  %v524_v4 = vld [vmem:[#allocation2 + $0x1e8] sm:$0xff] }
 0x201   :  { %v283_v14 = vmul.f32 0.5, %v282_v13 }
 0x203   :  { %v284_v15 = vsub.f32 1.5, %v283_v14  ;;  %v436_v14 = vld [vmem:[#allocation2 + $0x148] sm:$0xff] }
 0x204   :  { %456 = vmatpush.msra.mxu3 %v436_v14 }
 0x205   :  { %v285_v6 = vmul.f32 %v618_v10, %v284_v15  ;;  %v435_v15 = vld [vmem:[#allocation2 + $0x140] sm:$0xff] }
 0x206   :  { %457 = vmatpush.msra.mxu3 %v435_v15  ;;  %v523_v15 = vld [vmem:[#allocation2 + $0x1e0] sm:$0xff] }
 0x207   :  { %v289_v16 = vsel %vm288_vm10, %v618_v10, %v285_v6  ;;  %v434_v6 = vld [vmem:[#allocation2 + $0x138] sm:$0xff] }
 0x208   :  { %v290_v17 = vmul.f32 %v289_v16, %v743_v54  ;;  %458 = vmatpush.msra.mxu3 %v434_v6  ;;  %v433_v16 = vld [vmem:[#allocation2 + $0x130] sm:$0xff] }
 0x20a   :  { %v291_v18 = vmul.f32 %v290_v17, %v260_v35  ;;  %v296_v19 = vperm.slane %v290_v17, 4  ;;  %v432_v17 = vld [vmem:[#allocation2 + $0x128] sm:$0xff]  ;;  %459 = vmatpush.msra.mxu3 %v433_v16  ;;  %v522_v16 = vld [vmem:[#allocation2 + $0x1d8] sm:$0xff] }
 0x20c   :  { %v293_v20 = vrot.slane %v291_v18, 7  ;;  %v297_v22 = vmul.f32 %v296_v19, %v779_v3  ;;  %v298_v5 = vmul.f32 %v296_v19, %v781_v24  ;;  %v299_v30 = vmul.f32 %v296_v19, %v783_v25  ;;  %460 = vmatpush.msra.mxu3 %v432_v17 }
 0x20d   :  { %v300_v33 = vmul.f32 %v296_v19, %v788_v12  ;;  %v431_v19 = vld [vmem:[#allocation2 + $0x120] sm:$0xff] }
 0x20e   :  { %v295_v21 = vsub.f32 %v743_v54, %v293_v20  ;;  %461 = vmatpush.msra.mxu3 %v431_v19  ;;  %v521_v19 = vld [vmem:[#allocation2 + $0x1d0] sm:$0xff] }
 0x210   :  { %v301_v11 = vperm.slane %v295_v21, 5  ;;  %v430_v21 = vld [vmem:[#allocation2 + $0x118] sm:$0xff] }
 0x211   :  { %462 = vmatpush.msra.mxu3 %v430_v21  ;;  %v520_v21 = vld [vmem:[#allocation2 + $0x1c8] sm:$0xff] }
 0x212   :  { %v302_v26 = vadd.f32 %v301_v11, %v297_v22  ;;  %v303_v28 = vadd.f32 %v301_v11, %v298_v5  ;;  %v304_v31 = vadd.f32 %v301_v11, %v299_v30  ;;  %v305_v34 = vadd.f32 %v301_v11, %v300_v33 }
 0x214   :  { %v306_v27 = vmax.f32 %v302_v26, 0.0  ;;  %v307_v29 = vmax.f32 %v303_v28, 0.0  ;;  %v308_v32 = vmax.f32 %v304_v31, 0.0  ;;  %v309_v35 = vmax.f32 %v305_v34, 0.0  ;;  %v428_v26 = vld [vmem:[#allocation2 + $0x108] sm:$0xff] }
 0x216   :  { %342 = vmatmul.f32.vlgmr.msra.gmra.mxu2 %v306_v27 }
 0x21e   :  { %345 = vmatmul.f32.gmra.mxu2 %v307_v29 }
 0x226   :  { %348 = vmatmul.f32.gmra.mxu2 %v308_v32 }
 0x22e   :  { %351 = vmatmul.f32.gmra.mxu2 %v309_v35 }
 0x299   :  { %v803_v3 = vpop.f32.mrf.mxu2 }
 0x2a1   :  { %v805_v36 = vpop.f32.mrf.mxu2 }
 0x2a2   :  { %v355_v24 = vadd.f32 %v805_v36, %v803_v3 }
 0x2a9   :  { %v807_v37 = vpop.f32.mrf.mxu2 }
 0x2aa   :  { %v356_v38 = vadd.f32 %v355_v24, %v807_v37 }
 0x2b1   :  { %v812_v25 = vpop.f32.mrf.mxu2 }
 0x2b2   :  { %v357_v39 = vadd.f32 %v356_v38, %v812_v25 }
 0x2b4   :  { %v358_v12 = vrot.slane %v357_v39, 4 }
 0x2b6   :  { %v359_v40 = vadd.f32 %v358_v12, %v357_v39 }
 0x2b8   :  { %v360_v41 = vrot.slane %v359_v40, 2 }
 0x2ba   :  { %v361_v42 = vadd.f32 %v360_v41, %v359_v40 }
 0x2bc   :  { %v362_v43 = vrot.slane %v361_v42, 1 }
 0x2be   :  { %v363_v44 = vadd.f32 %v362_v43, %v361_v42 }
 0x2c0   :  { %v816_v45 = vmul.f32 %v363_v44, %v731_v23 }
 0x2c2   :  { %v365_v46 = vsub.f32 %v803_v3, %v816_v45  ;;  %v366_v47 = vsub.f32 %v805_v36, %v816_v45  ;;  %v367_v48 = vsub.f32 %v807_v37, %v816_v45  ;;  %v368_v49 = vsub.f32 %v812_v25, %v816_v45 }
 0x2c4   :  { %v369_v50 = vmul.f32 %v365_v46, %v365_v46  ;;  %v370_v51 = vmul.f32 %v366_v47, %v366_v47  ;;  %v371_v52 = vmul.f32 %v367_v48, %v367_v48  ;;  %v372_v55 = vmul.f32 %v368_v49, %v368_v49 }
 0x2c6   :  { %v373_v53 = vadd.f32 %v370_v51, %v369_v50 }
 0x2c8   :  { %v374_v56 = vadd.f32 %v373_v53, %v371_v52 }
 0x2ca   :  { %v375_v57 = vadd.f32 %v374_v56, %v372_v55 }
 0x2cc   :  { %v376_v58 = vrot.slane %v375_v57, 4 }
 0x2ce   :  { %v377_v60 = vadd.f32 %v376_v58, %v375_v57  ;;  %v683_v58 = vmov 2.0  }
 0x2d0   :  { %v378_v62 = vrot.slane %v377_v60, 2 }
 0x2d2   :  { %v379_v0 = vadd.f32 %v378_v62, %v377_v60 }
 0x2d4   :  { %v380_v2 = vrot.slane %v379_v0, 1 }
 0x2d6   :  { %v381_v8 = vadd.f32 %v380_v2, %v379_v0  ;;  %v526_v2 = vld [vmem:[#allocation2 + $0x1f8] sm:$0xff] }
 0x2d7   :  { %529 = vmatpush.msrb.mxu0 %v526_v2 }
 0x2d8   :  { %v382_v10 = vmul.f32 %v381_v8, %v731_v23  ;;  %v429_v23 = vld [vmem:[#allocation2 + $0x110] sm:$0xff] }
 0x2d9   :  { %463 = vmatpush.msra.mxu3 %v429_v23  ;;  %530 = vmatpush.msrb.mxu0 %v525_v9  ;;  %v519_v23 = vld [vmem:[#allocation2 + $0x1c0] sm:$0xff] }
 0x2da   :  { %v383_v13 = vadd.f32 1e-05, %v382_v10 }
 0x2db   :  { %464 = vmatpush.msra.mxu3 %v428_v26  ;;  %531 = vmatpush.msrb.mxu0 %v524_v4  ;;  %v518_v26 = vld [vmem:[#allocation2 + $0x1b8] sm:$0xff] }
 0x2dc   :  { %619 = vrsqrt.f32 %v383_v13  ;;  %vm390_vm12 = vweird.f32 %v383_v13 }
 0x2dd   :  { %621 = vrcp.f32 %v683_v58  ;;  %532 = vmatpush.msrb.mxu0 %v523_v15 }
 0x2df   :  { %533 = vmatpush.msrb.mxu0 %v522_v16 }
 0x2e1   :  { %534 = vmatpush.msrb.mxu0 %v521_v19 }
 0x2e2   :  { %v620_v18 = vpop.eup %619 }
 0x2e3   :  { %v385_v20 = vmul.f32 %v620_v18, %v383_v13  ;;  %vm391_vm11 = vweird.f32 %v620_v18  ;;  %v622_v59 = vpop.eup %621  ;;  %535 = vmatpush.msrb.mxu0 %v520_v21 }
 0x2e4   :  { %vm392_vm13 = vmor %vm390_vm12, %vm391_vm11  ;;  %v478_v60 = vmul.f32 2.0, %v622_v59  ;;  %vm482_vm0 = vweird.f32 %v622_v59 }
 0x2e5   :  { %v386_v22 = vmul.f32 %v620_v18, %v385_v20  ;;  %536 = vmatpush.msrb.mxu0 %v519_v23 }
 0x2e6   :  { %v479_v61 = vsub.f32 1.0, %v478_v60 }
 0x2e7   :  { %v387_v11 = vmul.f32 0.5, %v386_v22  ;;  %537 = vmatpush.msrb.mxu0 %v518_v26 }
 0x2e8   :  { %v480_v7 = vmul.f32 %v622_v59, %v479_v61 }
 0x2e9   :  { %v388_v27 = vsub.f32 1.5, %v387_v11 }
 0x2ea   :  { %v481_v13 = vadd.f32 %v622_v59, %v480_v7 }
 0x2eb   :  { %v389_v5 = vmul.f32 %v620_v18, %v388_v27 }
 0x2ec   :  { %v835_v17 = vsel %vm482_vm0, %v622_v59, %v481_v13 }
 0x2ed   :  { %v393_v28 = vsel %vm392_vm13, %v620_v18, %v389_v5  ;;  %v517_v5 = vld [vmem:[#allocation2 + $0x1b0] sm:$0xff] }
 0x2ee   :  { %v394_v29 = vmul.f32 %v393_v28, %v743_v54  ;;  %538 = vmatpush.msrb.mxu0 %v517_v5 }
 0x2f0   :  { %v395_v30 = vmul.f32 %v394_v29, %v816_v45  ;;  %v400_v31 = vperm.slane %v394_v29, 6  ;;  %v516_v29 = vld [vmem:[#allocation2 + $0x1a8] sm:$0xff] }
 0x2f1   :  { %539 = vmatpush.msrb.mxu0 %v516_v29 }
 0x2f2   :  { %v397_v32 = vrot.slane %v395_v30, 7  ;;  %v403_v34 = vmul.f32 %v400_v31, %v807_v37  ;;  %v404_v35 = vmul.f32 %v400_v31, %v812_v25  ;;  %v401_v38 = vmul.f32 %v400_v31, %v803_v3 }
 0x2f3   :  { %v402_v39 = vmul.f32 %v400_v31, %v805_v36  ;;  %v515_v31 = vld [vmem:[#allocation2 + $0x1a0] sm:$0xff] }
 0x2f4   :  { %v399_v33 = vsub.f32 %v743_v54, %v397_v32  ;;  %540 = vmatpush.msrb.mxu0 %v515_v31 }
 0x2f6   :  { %v405_v24 = vperm.slane %v399_v33, 7  ;;  %v514_v33 = vld [vmem:[#allocation2 + $0x198] sm:$0xff] }
 0x2f7   :  { %541 = vmatpush.msrb.mxu0 %v514_v33 }
 0x2f8   :  { %v408_v12 = vadd.f32 %v405_v24, %v403_v34  ;;  %v409_v40 = vadd.f32 %v405_v24, %v404_v35  ;;  %v406_v41 = vadd.f32 %v405_v24, %v401_v38  ;;  %v407_v42 = vadd.f32 %v405_v24, %v402_v39  ;;  %v513_v34 = vld [vmem:[#allocation2 + $0x190] sm:$0xff]  ;;  %v512_v24 = vld [vmem:[#allocation2 + $0x188] sm:$0xff] }
 0x2f9   :  { %542 = vmatpush.msrb.mxu0 %v513_v34 }
 0x2fa   :  { %v412_v43 = vmax.f32 %v408_v12, 0.0  ;;  %v413_v44 = vmax.f32 %v409_v40, 0.0  ;;  %v410_v45 = vmax.f32 %v406_v41, 0.0  ;;  %v411_v46 = vmax.f32 %v407_v42, 0.0 }
 0x2fb   :  { %543 = vmatpush.msrb.mxu0 %v512_v24 }
 0x2fc   :  { %v421_v47 = vmax.f32 %v412_v43, %v413_v44  ;;  %v414_v48 = vmax.f32 %v410_v45, %v411_v46  ;;  %v29_v45 = vld [vmem:[#allocation2 + $0x210] sm:$0xff] }
 0x2fd   :  { %v580_v21 = vperm.slane %v29_v45, 3 }
 0x2fe   :  { %v422_v54 = vrot.slane %v421_v47, 4  ;;  %v415_v49 = vrot.slane %v414_v48, 4 }
 0x300   :  { %v423_v37 = vmax.f32 %v421_v47, %v422_v54  ;;  %v416_v50 = vmax.f32 %v414_v48, %v415_v49  ;;  %v507_v48 = vperm.slane %v29_v45, 0 }
 0x302   :  { %v417_v25 = vrot.slane %v416_v50, 2  ;;  %v424_v51 = vrot.slane %v423_v37, 2 }
 0x304   :  { %v418_v52 = vmax.f32 %v416_v50, %v417_v25  ;;  %v425_v3 = vmax.f32 %v423_v37, %v424_v51  ;;  %v509_v37 = vperm.slane %v29_v45, 1 }
 0x306   :  { %v419_v53 = vrot.slane %v418_v52, 1  ;;  %v426_v36 = vrot.slane %v425_v3, 1 }
 0x308   :  { %v420_v55 = vmax.f32 %v418_v52, %v419_v53  ;;  %v427_v56 = vmax.f32 %v425_v3, %v426_v36 }
 0x30a   :  { %v447_v57 = vsel %vm446_vm14, %v427_v56, %v420_v55 }
 0x30b   :  { %465 = vmatmul.f32.vlgmr.msra.gmra.mxu3 %v447_v57 }
 0x38e   :  { %v466_v62 = vpop.f32.mrf.mxu3 }
 0x38f   :  { %v470_v0 = vsel %vm469_vm15, %v466_v62, 0.0 }
 0x390   :  { %v471_v1 = vrot.slane %v470_v0, 4 }
 0x392   :  { %v472_v8 = vadd.f32 %v471_v1, %v470_v0 }
 0x394   :  { %v473_v10 = vrot.slane %v472_v8, 2 }
 0x396   :  { %v474_v14 = vadd.f32 %v473_v10, %v472_v8 }
 0x398   :  { %v475_v6 = vrot.slane %v474_v14, 1 }
 0x39a   :  { %v476_v18 = vadd.f32 %v475_v6, %v474_v14 }
 0x39c   :  { %v484_v20 = vmul.f32 %v835_v17, %v476_v18  ;;  %v578_v18 = vperm.slane %v29_v45, 2 }
 0x39e   :  { %v485_v22 = vsub.f32 %v466_v62, %v484_v20 }
 0x3a0   :  { %v486_v11 = vmul.f32 %v485_v22, %v485_v22 }
 0x3a2   :  { %v487_v27 = vsel %vm469_vm15, %v486_v11, 0.0 }
 0x3a3   :  { %v488_v28 = vrot.slane %v487_v27, 4 }
 0x3a5   :  { %v489_v30 = vadd.f32 %v488_v28, %v487_v27 }
 0x3a7   :  { %v490_v32 = vrot.slane %v489_v30, 2 }
 0x3a9   :  { %v491_v35 = vadd.f32 %v490_v32, %v489_v30 }
 0x3ab   :  { %v492_v38 = vrot.slane %v491_v35, 1 }
 0x3ad   :  { %v493_v39 = vadd.f32 %v492_v38, %v491_v35 }
 0x3af   :  { %v494_v12 = vmul.f32 %v493_v39, %v835_v17 }
 0x3b1   :  { %v495_v40 = vadd.f32 1e-05, %v494_v12 }
 0x3b3   :  { %623 = vrsqrt.f32 %v495_v40  ;;  %vm502_vm2 = vweird.f32 %v495_v40 }
 0x3b9   :  { %v624_v41 = vpop.eup %623 }
 0x3ba   :  { %v497_v42 = vmul.f32 %v624_v41, %v495_v40  ;;  %vm503_vm1 = vweird.f32 %v624_v41 }
 0x3bb   :  { %vm504_vm3 = vmor %vm502_vm2, %vm503_vm1 }
 0x3bc   :  { %v498_v43 = vmul.f32 %v624_v41, %v497_v42 }
 0x3be   :  { %v499_v44 = vmul.f32 0.5, %v498_v43 }
 0x3c0   :  { %v500_v46 = vsub.f32 1.5, %v499_v44 }
 0x3c2   :  { %v501_v47 = vmul.f32 %v624_v41, %v500_v46 }
 0x3c4   :  { %v505_v54 = vsel %vm504_vm3, %v624_v41, %v501_v47 }
 0x3c5   :  { %v506_v49 = vmul.f32 %v505_v54, %v485_v22 }
 0x3c7   :  { %v508_v50 = vmul.f32 %v507_v48, %v506_v49 }
 0x3c9   :  { %v510_v25 = vadd.f32 %v509_v37, %v508_v50 }
 0x3cb   :  { %v511_v51 = vmax.f32 %v510_v25, 0.0 }
 0x3cd   :  { %544 = vmatmul.f32.vlgmr.msrb.gmra.mxu0 %v511_v51 }
 0x44a   :  { %v545_v52 = vpop.f32.mrf.mxu0 }
 0x44b   :  { %v548_v3 = vsel %vm469_vm15, %v545_v52, 0.0 }
 0x44c   :  { %v549_v53 = vrot.slane %v548_v3, 4 }
 0x44e   :  { %v550_v36 = vadd.f32 %v549_v53, %v548_v3 }
 0x450   :  { %v551_v55 = vrot.slane %v550_v36, 2 }
 0x452   :  { %v552_v56 = vadd.f32 %v551_v55, %v550_v36 }
 0x454   :  { %v553_v57 = vrot.slane %v552_v56, 1 }
 0x456   :  { %v554_v58 = vadd.f32 %v553_v57, %v552_v56 }
 0x458   :  { %v555_v59 = vmul.f32 %v554_v58, %v835_v17 }
 0x45a   :  { %v556_v60 = vsub.f32 %v545_v52, %v555_v59 }
 0x45c   :  { %v557_v61 = vmul.f32 %v556_v60, %v556_v60 }
 0x45e   :  { %v558_v62 = vsel %vm469_vm15, %v557_v61, 0.0 }
 0x45f   :  { %v559_v63 = vrot.slane %v558_v62, 4 }
 0x461   :  { %v560_v0 = vadd.f32 %v559_v63, %v558_v62 }
 0x463   :  { %v561_v1 = vrot.slane %v560_v0, 2 }
 0x465   :  { %v562_v2 = vadd.f32 %v561_v1, %v560_v0 }
 0x467   :  { %v563_v7 = vrot.slane %v562_v2, 1 }
 0x469   :  { %v564_v8 = vadd.f32 %v563_v7, %v562_v2 }
 0x46b   :  { %v565_v9 = vmul.f32 %v564_v8, %v835_v17 }
 0x46d   :  { %v566_v10 = vadd.f32 1e-05, %v565_v9 }
 0x46f   :  { %625 = vrsqrt.f32 %v566_v10  ;;  %vm573_vm5 = vweird.f32 %v566_v10 }
 0x475   :  { %v626_v4 = vpop.eup %625 }
 0x476   :  { %v568_v13 = vmul.f32 %v626_v4, %v566_v10  ;;  %vm574_vm4 = vweird.f32 %v626_v4 }
 0x477   :  { %vm575_vm6 = vmor %vm573_vm5, %vm574_vm4 }
 0x478   :  { %v569_v14 = vmul.f32 %v626_v4, %v568_v13 }
 0x47a   :  { %v570_v15 = vmul.f32 0.5, %v569_v14 }
 0x47c   :  { %v571_v6 = vsub.f32 1.5, %v570_v15 }
 0x47e   :  { %v572_v16 = vmul.f32 %v626_v4, %v571_v6 }
 0x480   :  { %v576_v19 = vsel %vm575_vm6, %v626_v4, %v572_v16 }
 0x481   :  { %v577_v20 = vmul.f32 %v576_v19, %v556_v60 }
 0x483   :  { %v579_v22 = vmul.f32 %v578_v18, %v577_v20 }
 0x485   :  { %v581_v17 = vadd.f32 %v580_v21, %v579_v22 }
 0x487   :  { %v582_v23 = vmax.f32 %v581_v17, 0.0 }
 0x489   :  { %583 = vst [vmem:[#allocation5] sm:$0x3] %v582_v23 }
 0x48a   :  { %594 = dma.vmem_to_hbm [thread:$0]  %s590_s23, 32, %s592_s26, [#allocation4]  }
 0x48b   :  { %677 = dma.done.wait [#allocation4], 32  }
 0x48c   :  { %678 = vsyncadd [#allocation4], 4294967264 }
 0x48d   :  { %599 = vsyncpa [#allocation3], 1 }
 0x48e   :  { %600 = vsyncpa [#allocation4], 1 }

</bundles_post_ra>
